<compile_context>
chip_gen: v7x
topology: tpu7x:2x2x1
jax: 0.10.0
libtpu: 0.0.40
codegen_flags: <defaults>
</compile_context>

<pallas_src>
import jax
import jax.numpy as jnp
from jax.experimental import pallas as pl
from jax.experimental.pallas import tpu as pltpu

BN_EPS = 1e-5
LANE = 128


def _round_up(x, m):
    return (x + m - 1) // m * m


# --------------------------------------------------------------------------- #
# Kernels
# --------------------------------------------------------------------------- #
def conv_stats_kernel(patches_ref, w_ref, sum_ref, sq_ref):
    """Pass 1: conv-as-matmul on the MXU, emit per-tile partial (sum, sumsq)."""
    conv = jnp.dot(patches_ref[...], w_ref[...],
                   preferred_element_type=jnp.float32)        # (tile_m, c_pad) f32
    sum_ref[...] = jnp.sum(conv, axis=0, keepdims=True)[None]  # (1, 1, c_pad)
    sq_ref[...] = jnp.sum(conv * conv, axis=0, keepdims=True)[None]


def conv_bn_silu_kernel(patches_ref, w_ref, scale_ref, shift_ref, out_ref):
    """Pass 2: recompute the conv matmul, fused folded-BN affine + SiLU.

    Recomputing (bf16 patches tile + resident weights) is cheaper than writing
    and re-reading an f32 conv intermediate on a memory-bound kernel.
    """
    conv = jnp.dot(patches_ref[...], w_ref[...],
                   preferred_element_type=jnp.float32)        # f32 epilogue (v5e-safe)
    y = conv * scale_ref[...] + shift_ref[...]
    # SiLU: y * sigmoid(y); exp -> EUP, reciprocal(approx) -> EUP (VALU stays free).
    sig = pl.reciprocal(1.0 + jnp.exp(-y), approx=True)
    out_ref[...] = (y * sig).astype(out_ref.dtype)


# --------------------------------------------------------------------------- #
# Wrapper
# --------------------------------------------------------------------------- #
def _pass_vmem_bytes(tile_m, k, c_pad, out_itemsize):
    """Conservative double-buffered working-set estimate (max of the two passes)."""
    patches_blk = tile_m * k * 2          # bf16 stream
    w_blk = k * c_pad * 2                 # bf16, revisited; budget 2 buffers anyway
    stats_blk = 2 * c_pad * 4             # (1,1,c_pad) f32 sum + sumsq
    affine_blk = 2 * c_pad * 4            # scale + shift
    out_blk = tile_m * c_pad * out_itemsize
    pass1 = 2 * (patches_blk + w_blk + stats_blk)
    pass2 = 2 * (patches_blk + w_blk + affine_blk + out_blk)
    return max(pass1, pass2)


def conv_bn_act(x_nchw, weight, gamma, beta, *, tile_m=512, out_dtype=jnp.bfloat16):
    """x_nchw: (N, C_in, H, W); weight: (C_out, C_in, 3, 3) torch OIHW layout.

    tile_m: rows of the (M = N*H*W, C_out) activation per grid step.  Kept a
    multiple of 256 (bf16 sublane-packed, near HBM roofline) and auto-capped
    against a per-generation VMEM budget (v7x: 64 MiB per TensorCore).
    """
    n, c_in, h, w = x_nchw.shape
    c_out, c_in_w, kh, kw = weight.shape
    assert (kh, kw) == (3, 3) and c_in_w == c_in

    m = n * h * w
    k = 9 * c_in                              # no K padding in HBM (review item)
    c_pad = _round_up(c_out, LANE)            # lane-dense output stores
    # NOTE: on v6e/v7x (2x256 MXU) production shapes may prefer c_pad multiple of
    # 256; kept at 128 here since the kernel is HBM-bound and extra padded
    # columns are wasted writeback.
    out_itemsize = jnp.dtype(out_dtype).itemsize

    # ---- per-generation VMEM budget & tile sizing ----
    try:
        vmem_cap = int(pltpu.get_tpu_info().vmem_capacity_bytes)
    except Exception:
        vmem_cap = 64 * 1024 * 1024           # conservative: v7x per-TensorCore VMEM
    vmem_budget = (vmem_cap * 3) // 4

    tile_m = max(256, _round_up(tile_m, 256))
    tile_m = min(tile_m, _round_up(_round_up(m, 16), 256))
    while tile_m > 256 and _pass_vmem_bytes(tile_m, k, c_pad, out_itemsize) > vmem_budget:
        tile_m -= 256

    num_tiles = pl.cdiv(m, tile_m)
    m_pad = num_tiles * tile_m

    # ---- glue: NCHW -> NHWC, spatial pad, im2col in bf16 (no K pad) ----
    x = jnp.transpose(x_nchw, (0, 2, 3, 1)).astype(jnp.bfloat16)      # (N, H, W, Cin)
    x_sp = jnp.pad(x, ((0, 0), (1, 1), (1, 1), (0, 0)))
    taps = [x_sp[:, i:i + h, j:j + w, :] for i in range(3) for j in range(3)]
    patches = jnp.stack(taps, axis=3).reshape(m, k)                   # (M, K) bf16
    patches = jnp.pad(patches, ((0, m_pad - m), (0, 0)))              # exact zero rows

    # weight OIHW -> (KH, KW, Cin, Cout) -> (K, Cout), C_out lane-padded, bf16.
    w_mat = jnp.transpose(weight.astype(jnp.bfloat16), (2, 3, 1, 0)).reshape(k, c_out)
    w_mat = jnp.pad(w_mat, ((0, 0), (0, c_pad - c_out)))

    cparams = pltpu.CompilerParams(
        dimension_semantics=("parallel",),            # M tiles independent -> megacore
        vmem_limit_bytes=int(max(32 * 1024 * 1024, vmem_budget)))

    # ---- pass 1: per-tile partial (sum, sumsq) of the conv activation ----
    sums, sqs = pl.pallas_call(
        conv_stats_kernel,
        out_shape=(
            jax.ShapeDtypeStruct((num_tiles, 1, c_pad), jnp.float32),
            jax.ShapeDtypeStruct((num_tiles, 1, c_pad), jnp.float32),
        ),
        grid=(num_tiles,),
        in_specs=[
            # if profiling shows exposed DMA on this stream (v7x), add
            # pipeline_mode=pl.Buffered(3) here (costs one extra buffer of VMEM)
            pl.BlockSpec((tile_m, k), lambda i: (i, 0)),
            pl.BlockSpec((k, c_pad), lambda i: (0, 0)),   # weights resident
        ],
        out_specs=(
            pl.BlockSpec((1, 1, c_pad), lambda i: (i, 0, 0)),
            pl.BlockSpec((1, 1, c_pad), lambda i: (i, 0, 0)),
        ),
        compiler_params=cparams,
    )(patches, w_mat)

    # ---- tiny cross-tile BN stat reduction + affine fold (wrapper, O(C)) ----
    ssum = jnp.sum(sums[:, 0, :], axis=0)                  # (c_pad,)
    ssq = jnp.sum(sqs[:, 0, :], axis=0)
    mean = ssum / m                                        # padded rows are exact zeros
    var = jnp.maximum(ssq / m - mean * mean, 0.0)          # biased (training-mode BN)
    inv_std = jax.lax.rsqrt(var + BN_EPS)
    gamma_p = jnp.pad(gamma.astype(jnp.float32), (0, c_pad - c_out))
    beta_p = jnp.pad(beta.astype(jnp.float32), (0, c_pad - c_out))
    scale = (gamma_p * inv_std).reshape(1, c_pad)
    shift = (beta_p - mean * gamma_p * inv_std).reshape(1, c_pad)

    # ---- pass 2: recompute conv, y = conv*scale + shift, SiLU, bf16 store ----
    out_flat = pl.pallas_call(
        conv_bn_silu_kernel,
        out_shape=jax.ShapeDtypeStruct((m_pad, c_pad), out_dtype),
        grid=(num_tiles,),
        in_specs=[
            pl.BlockSpec((tile_m, k), lambda i: (i, 0)),
            pl.BlockSpec((k, c_pad), lambda i: (0, 0)),    # weights resident
            pl.BlockSpec((1, c_pad), lambda i: (0, 0)),    # scale resident
            pl.BlockSpec((1, c_pad), lambda i: (0, 0)),    # shift resident
        ],
        out_specs=pl.BlockSpec((tile_m, c_pad), lambda i: (i, 0)),
        compiler_params=cparams,
    )(patches, w_mat, scale, shift)

    # strip padding: (M, C_out) -> NHWC -> NCHW (kept for torch-module semantics;
    # skip this transpose if the consumer accepts NHWC).
    out = out_flat[:m, :c_out].reshape(n, h, w, c_out)
    return jnp.transpose(out, (0, 3, 1, 2))


def _reference(x_nchw, weight, gamma, beta):
    """Pure-JAX f32 reference (conv + training-mode BN + SiLU)."""
    conv = jax.lax.conv_general_dilated(
        x_nchw.astype(jnp.float32), weight.astype(jnp.float32),
        window_strides=(1, 1), padding=((1, 1), (1, 1)),
        dimension_numbers=("NCHW", "OIHW", "NCHW"))
    mean = jnp.mean(conv, axis=(0, 2, 3), keepdims=True)
    var = jnp.mean((conv - mean) ** 2, axis=(0, 2, 3), keepdims=True)  # biased
    y = (conv - mean) * jax.lax.rsqrt(var + BN_EPS)
    y = y * gamma.reshape(1, -1, 1, 1) + beta.reshape(1, -1, 1, 1)
    return y * jax.nn.sigmoid(y)


if __name__ == "__main__":
    # ConvBnAct(in_channels=4, out_channels=8, kernel_size=3) at small shapes.
    N, C_IN, H, W = 2, 4, 16, 16
    C_OUT = 8

    key = jax.random.PRNGKey(0)
    kx, kw = jax.random.split(key)
    x = jax.random.normal(kx, (N, C_IN, H, W), dtype=jnp.float32)
    weight = jax.random.normal(kw, (C_OUT, C_IN, 3, 3), dtype=jnp.float32) * 0.1
    gamma = jnp.ones((C_OUT,), jnp.float32)   # torch BN defaults
    beta = jnp.zeros((C_OUT,), jnp.float32)

    fn = jax.jit(conv_bn_act, static_argnames=("tile_m", "out_dtype"))
    # tile_m=256 here so M=512 exercises 2 tiles (pipelining + cross-tile stat
    # combine); production default is 512+ per the VMEM-budgeted sizing above.
    out = fn(x, weight, gamma, beta, tile_m=256)
    out = jax.block_until_ready(out)

    ref = _reference(x, weight, gamma, beta)
    assert out.shape == (N, C_OUT, H, W)
    # bf16 MXU operands + bf16 output with f32 accumulation/epilogue.
    err = float(jnp.max(jnp.abs(out.astype(jnp.float32) - ref)))
    assert err < 5e-2, err

    print("KERNEL_OK")
</pallas_src>

<mosaic_0001>
module attributes {stable_mosaic.version = 11 : i64} {
  func.func @conv_stats_kernel(%arg0: i32, %arg1: memref<256x36xbf16, #tpu.memory_space<vmem>>, %arg2: memref<36x128xbf16, #tpu.memory_space<vmem>>, %arg3: memref<1x1x128xf32, #tpu.memory_space<vmem>>, %arg4: memref<1x1x128xf32, #tpu.memory_space<vmem>>) attributes {dimension_semantics = [#tpu.dimension_semantics<parallel>], iteration_bounds = array<i64: 2>, scalar_prefetch = 0 : i64, scratch_operands = 0 : i64, tpu.core_type = #tpu.core_type<tc>, window_params = [{transform_indices = @transform_0, window_bounds = array<i64: 256, 36>}, {pipeline_mode = #tpu.pipeline_mode<synchronous>, transform_indices = @transform_1, window_bounds = array<i64: 36, 128>}, {transform_indices = @transform_2, window_bounds = array<i64: 1, 1, 128>}, {transform_indices = @transform_3, window_bounds = array<i64: 1, 1, 128>}]} {
    %c0 = arith.constant 0 : index
    %c0_0 = arith.constant 0 : index
    %0 = vector.load %arg1[%c0, %c0_0] : memref<256x36xbf16, #tpu.memory_space<vmem>>, vector<256x36xbf16>
    %c0_1 = arith.constant 0 : index
    %c0_2 = arith.constant 0 : index
    %1 = vector.load %arg2[%c0_1, %c0_2] : memref<36x128xbf16, #tpu.memory_space<vmem>>, vector<36x128xbf16>
    %cst = arith.constant dense<0.000000e+00> : vector<256x128xf32>
    %2 = tpu.matmul %0, %1, %cst {dimension_numbers = #tpu.dot_dimension_numbers<[1], [0], [0], [1], [0, 0, 1, 1], [], []>} : vector<256x36xbf16>, vector<36x128xbf16>, vector<256x128xf32> -> vector<256x128xf32>
    %cst_3 = arith.constant dense<0.000000e+00> : vector<128xf32>
    %3 = vector.multi_reduction <add>, %2, %cst_3 [0] : vector<256x128xf32> to vector<128xf32>
    %4 = vector.shape_cast %3 : vector<128xf32> to vector<1x128xf32>
    %5 = vector.shape_cast %4 : vector<1x128xf32> to vector<1x1x128xf32>
    %c0_4 = arith.constant 0 : index
    %c0_5 = arith.constant 0 : index
    %c0_6 = arith.constant 0 : index
    %6 = vector.load %arg3[%c0_4, %c0_5, %c0_6] : memref<1x1x128xf32, #tpu.memory_space<vmem>>, vector<1x1x128xf32>
    tpu.vector_store %arg3[%c0_4, %c0_5, %c0_6], %5 {strides = array<i32>} : memref<1x1x128xf32, #tpu.memory_space<vmem>>, vector<1x1x128xf32>,
    %7 = arith.mulf %2, %2 : vector<256x128xf32>
    %cst_7 = arith.constant dense<0.000000e+00> : vector<128xf32>
    %8 = vector.multi_reduction <add>, %7, %cst_7 [0] : vector<256x128xf32> to vector<128xf32>
    %9 = vector.shape_cast %8 : vector<128xf32> to vector<1x128xf32>
    %10 = vector.shape_cast %9 : vector<1x128xf32> to vector<1x1x128xf32>
    %c0_8 = arith.constant 0 : index
    %c0_9 = arith.constant 0 : index
    %c0_10 = arith.constant 0 : index
    %11 = vector.load %arg4[%c0_8, %c0_9, %c0_10] : memref<1x1x128xf32, #tpu.memory_space<vmem>>, vector<1x1x128xf32>
    tpu.vector_store %arg4[%c0_8, %c0_9, %c0_10], %10 {strides = array<i32>} : memref<1x1x128xf32, #tpu.memory_space<vmem>>, vector<1x1x128xf32>,
    return
  }
  func.func @transform_0(%arg0: i32) -> (i32, i32) {
    %c0_i32 = arith.constant 0 : i32
    %c0_i32_0 = arith.constant 0 : i32
    return %arg0, %c0_i32 : i32, i32
  }
  func.func @transform_1(%arg0: i32) -> (i32, i32) {
    %c0_i32 = arith.constant 0 : i32
    %c0_i32_0 = arith.constant 0 : i32
    %c0_i32_1 = arith.constant 0 : i32
    return %c0_i32, %c0_i32_0 : i32, i32
  }
  func.func @transform_2(%arg0: i32) -> (i32, i32, i32) {
    %c0_i32 = arith.constant 0 : i32
    %c0_i32_0 = arith.constant 0 : i32
    %c0_i32_1 = arith.constant 0 : i32
    return %arg0, %c0_i32, %c0_i32_0 : i32, i32, i32
  }
  func.func @transform_3(%arg0: i32) -> (i32, i32, i32) {
    %c0_i32 = arith.constant 0 : i32
    %c0_i32_0 = arith.constant 0 : i32
    %c0_i32_1 = arith.constant 0 : i32
    return %arg0, %c0_i32, %c0_i32_0 : i32, i32, i32
  }
}

module attributes {stable_mosaic.version = 11 : i64} {
  func.func @conv_bn_silu_kernel(%arg0: i32, %arg1: memref<256x36xbf16, #tpu.memory_space<vmem>>, %arg2: memref<36x128xbf16, #tpu.memory_space<vmem>>, %arg3: memref<1x128xf32, #tpu.memory_space<vmem>>, %arg4: memref<1x128xf32, #tpu.memory_space<vmem>>, %arg5: memref<256x128xbf16, #tpu.memory_space<vmem>>) attributes {dimension_semantics = [#tpu.dimension_semantics<parallel>], iteration_bounds = array<i64: 2>, scalar_prefetch = 0 : i64, scratch_operands = 0 : i64, tpu.core_type = #tpu.core_type<tc>, window_params = [{transform_indices = @transform_0, window_bounds = array<i64: 256, 36>}, {pipeline_mode = #tpu.pipeline_mode<synchronous>, transform_indices = @transform_1, window_bounds = array<i64: 36, 128>}, {pipeline_mode = #tpu.pipeline_mode<synchronous>, transform_indices = @transform_2, window_bounds = array<i64: 1, 128>}, {pipeline_mode = #tpu.pipeline_mode<synchronous>, transform_indices = @transform_3, window_bounds = array<i64: 1, 128>}, {transform_indices = @transform_4, window_bounds = array<i64: 256, 128>}]} {
    %c0 = arith.constant 0 : index
    %c0_0 = arith.constant 0 : index
    %0 = vector.load %arg1[%c0, %c0_0] : memref<256x36xbf16, #tpu.memory_space<vmem>>, vector<256x36xbf16>
    %c0_1 = arith.constant 0 : index
    %c0_2 = arith.constant 0 : index
    %1 = vector.load %arg2[%c0_1, %c0_2] : memref<36x128xbf16, #tpu.memory_space<vmem>>, vector<36x128xbf16>
    %cst = arith.constant dense<0.000000e+00> : vector<256x128xf32>
    %2 = tpu.matmul %0, %1, %cst {dimension_numbers = #tpu.dot_dimension_numbers<[1], [0], [0], [1], [0, 0, 1, 1], [], []>} : vector<256x36xbf16>, vector<36x128xbf16>, vector<256x128xf32> -> vector<256x128xf32>
    %c0_3 = arith.constant 0 : index
    %c0_4 = arith.constant 0 : index
    %3 = vector.load %arg3[%c0_3, %c0_4] : memref<1x128xf32, #tpu.memory_space<vmem>>, vector<1x128xf32>
    %4 = vector.broadcast %3 : vector<1x128xf32> to vector<256x128xf32>
    %5 = arith.mulf %2, %4 : vector<256x128xf32>
    %c0_5 = arith.constant 0 : index
    %c0_6 = arith.constant 0 : index
    %6 = vector.load %arg4[%c0_5, %c0_6] : memref<1x128xf32, #tpu.memory_space<vmem>>, vector<1x128xf32>
    %7 = vector.broadcast %6 : vector<1x128xf32> to vector<256x128xf32>
    %8 = arith.addf %5, %7 : vector<256x128xf32>
    %cst_7 = arith.constant 0.000000e+00 : f32
    %9 = vector.broadcast %cst_7 : f32 to vector<256x128xf32>
    %10 = arith.subf %9, %8 : vector<256x128xf32>
    %11 = math.exp %10 : vector<256x128xf32>
    %cst_8 = arith.constant 1.000000e+00 : f32
    %12 = vector.broadcast %cst_8 : f32 to vector<256x128xf32>
    %13 = arith.addf %12, %11 : vector<256x128xf32>
    %14 = tpu.reciprocal %13 {approx = true} : vector<256x128xf32> -> vector<256x128xf32>
    %15 = arith.mulf %8, %14 : vector<256x128xf32>
    %16 = arith.truncf %15 : vector<256x128xf32> to vector<256x128xbf16>
    %c0_9 = arith.constant 0 : index
    %c0_10 = arith.constant 0 : index
    %17 = vector.load %arg5[%c0_9, %c0_10] : memref<256x128xbf16, #tpu.memory_space<vmem>>, vector<256x128xbf16>
    tpu.vector_store %arg5[%c0_9, %c0_10], %16 {strides = array<i32>} : memref<256x128xbf16, #tpu.memory_space<vmem>>, vector<256x128xbf16>,
    return
  }
  func.func @transform_0(%arg0: i32) -> (i32, i32) {
    %c0_i32 = arith.constant 0 : i32
    %c0_i32_0 = arith.constant 0 : i32
    return %arg0, %c0_i32 : i32, i32
  }
  func.func @transform_1(%arg0: i32) -> (i32, i32) {
    %c0_i32 = arith.constant 0 : i32
    %c0_i32_0 = arith.constant 0 : i32
    %c0_i32_1 = arith.constant 0 : i32
    return %c0_i32, %c0_i32_0 : i32, i32
  }
  func.func @transform_2(%arg0: i32) -> (i32, i32) {
    %c0_i32 = arith.constant 0 : i32
    %c0_i32_0 = arith.constant 0 : i32
    %c0_i32_1 = arith.constant 0 : i32
    return %c0_i32, %c0_i32_0 : i32, i32
  }
  func.func @transform_3(%arg0: i32) -> (i32, i32) {
    %c0_i32 = arith.constant 0 : i32
    %c0_i32_0 = arith.constant 0 : i32
    %c0_i32_1 = arith.constant 0 : i32
    return %c0_i32, %c0_i32_0 : i32, i32
  }
  func.func @transform_4(%arg0: i32) -> (i32, i32) {
    %c0_i32 = arith.constant 0 : i32
    %c0_i32_0 = arith.constant 0 : i32
    return %arg0, %c0_i32 : i32, i32
  }
}

</mosaic_0001>

<bundles_post_ra>
// kernel: conv_bn_act.2
= control target key start
LH: loop header
LB: loop body
LE: loop exit
PB: predicated region body
PF: predicated region fallthrough
CT: control target
= control target key end

     0   :  { %s869_s12 = smov 0   ;;  %s967_s0 = inlined_call_operand.vmem [shape: bf16[512,36], index: 0, kind: input, shape index: {}]   ;;  %s968_s1 = inlined_call_operand.vmem [shape: bf16[36,128], index: 1, kind: input, shape index: {}]   ;;  %s969_s2 = inlined_call_operand.vmem [shape: f32[2,1,128], index: 2, kind: output, shape index: {0}]   ;;  %s970_s3 = inlined_call_operand.vmem [shape: f32[2,1,128], index: 3, kind: output, shape index: {1}]  }
   0x1 LB: > { %s875_s13 = sadd.s32 4294967295, %s847_s12   ;;  %p709_p0 = scmp.ge.s32.totalorder %s847_s12, 1  ;;  %s847_s12 = sphi %s869_s12, %s14_s12  }
   0x2   : > { %p141_p1 = scmp.lt.s32.totalorder %s847_s12, 3 }
   0x4   : > { %p142_p2 = pnand %p709_p0, %p141_p1 }
   0x5   : > { %v822_v0 = vld [vmem:[%s968_s1] sm:$0xff] (!%p142_p2)   ;;  %v823_v1 = vld [vmem:[%s968_s1 + $0x8] sm:$0xff] (!%p142_p2)   ;;  %s710_s18 = sshll.u32 (!%p142_p2), %s875_s13, 5  ;;  %v824_v2 = vld [vmem:[%s968_s1 + $0x10] ss:$0 sps:$4 sm:$0x33] (!%p142_p2)  }
   0x6   : > { %145 = sbr.rel (%p142_p2) target bundleno = 310 (0x136), region = 28  ;;  %768 = vmatprep.subr.bf16.mxu0 (!%p142_p2), %v822_v0  ;;  %p167_p3 = scmp.lt.s32.totalorder (!%p142_p2), %s710_s18, 63  ;;  %806 = vmatprep.subr.bf16.mxu1 (!%p142_p2), %v822_v0  ;;  %vm360_vm0 = vcmask (!%p142_p2), 1041408   ;;  %vm311_vm1 = vcmask (!%p142_p2), 293888  }
   0x7   : > { %769 = vmatpush3.bf16.msra.mxu0 (!%p142_p2), %v822_v0  ;;  %809 = vmatpush3.bf16.msra.mxu1 (!%p142_p2), %v822_v0  ;;  %v362_v3 = vsel (!%p142_p2), %vm360_vm0, %v824_v2, 0  ;;  %p172_p4 = scmp.lt.s32.totalorder (!%p142_p2), %s875_s13, 1 }
   0x8   : > { %770 = vmatprep.subr.bf16.mxu0 (!%p142_p2), %v823_v1  ;;  %807 = vmatprep.subr.bf16.mxu1 (!%p142_p2), %v823_v1 }
   0xb   : > { %771 = vmatpush3.bf16.msra.mxu0 (!%p142_p2), %v823_v1  ;;  %810 = vmatpush3.bf16.msra.mxu1 (!%p142_p2), %v823_v1 }
   0xc   : > { %812 = vmatprep.subr.msk.bf16.mxu0 (!%p142_p2), %vm360_vm0, %v824_v2  ;;  %813 = vmatprep.subr.msk.bf16.mxu1 (!%p142_p2), %vm360_vm0, %v824_v2 }
   0xd   : > { %s972_s18 = smov (!%p167_p3, %s710_s18), 63  ;;  %s974_s13 = smov (!%p172_p4, %s875_s13), 1 }
   0xe   : > { %s711_s21 = sshll.u32 %s972_s18, 2  ;;  %s174_s27 = scalar_lea.vmem %s969_s2, %s974_s13 }
   0xf   : > { %s892_s24 = scalar_lea.vmem %s967_s0, %s711_s21  ;;  %773 = vmatpush3.bf16.msra.mxu0 %v362_v3  ;;  %811 = vmatpush3.bf16.msra.mxu1 %v362_v3  ;;  %s177_s30 = scalar_lea.vmem %s970_s3, %s974_s13 }
  0x10   : > { %v825_v4 = vld [vmem:[%s892_s24] sm:$0xff]   ;;  %v826_v5 = vld [vmem:[%s892_s24 + $0x8] sm:$0xff]   ;;  %v827_v6 = vld [vmem:[%s892_s24 + $0x10] sm:$0xff]  }
  0x11   : > { %774 = vmatprep.mubr.msk.bf16.mxu0 %vm311_vm1, %v825_v4  ;;  %v828_v7 = vld [vmem:[%s892_s24 + $0x18] sm:$0xff]   ;;  %v833_v8 = vld [vmem:[%s892_s24 + $0x40] sm:$0xff]   ;;  %v834_v9 = vld [vmem:[%s892_s24 + $0x48] sm:$0xff]  }
  0x12   : > { %775 = vmatmul.mubr.msk.bf16.vlgmr.msra.gmra.mrb[0].mxu0 %vm311_vm1, %v826_v5  ;;  %790 = vmatprep.mubr.msk.bf16.mxu1 %vm311_vm1, %v833_v8  ;;  %v835_v10 = vld [vmem:[%s892_s24 + $0x50] sm:$0xff]   ;;  %v829_v11 = vld [vmem:[%s892_s24 + $0x20] sm:$0xff]   ;;  %v836_v12 = vld [vmem:[%s892_s24 + $0x58] sm:$0xff]  }
  0x13   : > { %778 = vmatprep.mubr.msk.bf16.mxu0 %vm311_vm1, %v827_v6  ;;  %791 = vmatmul.mubr.msk.bf16.vlgmr.msra.gmra.mrb[0].mxu1 %vm311_vm1, %v834_v9  ;;  %v837_v13 = vld [vmem:[%s892_s24 + $0x60] sm:$0xff]   ;;  %v830_v14 = vld [vmem:[%s892_s24 + $0x28] sm:$0xff]   ;;  %v831_v15 = vld [vmem:[%s892_s24 + $0x30] sm:$0xff]  }
  0x14   : > { %794 = vmatprep.mubr.msk.bf16.mxu1 %vm311_vm1, %v835_v10  ;;  %v838_v16 = vld [vmem:[%s892_s24 + $0x68] sm:$0xff]   ;;  %v839_v17 = vld [vmem:[%s892_s24 + $0x70] sm:$0xff]   ;;  %v832_v18 = vld [vmem:[%s892_s24 + $0x38] sm:$0xff]  }
  0x15   : > { %v840_v19 = vld [vmem:[%s892_s24 + $0x78] sm:$0xff]  }
  0x1a   : > { %779 = vmatmul.mubr.msk.bf16.gmra.mrb[4].mxu0 %vm311_vm1, %v828_v7 }
  0x1b   : > { %782 = vmatprep.mubr.msk.bf16.mxu0 %vm311_vm1, %v829_v11  ;;  %795 = vmatmul.mubr.msk.bf16.gmra.mrb[4].mxu1 %vm311_vm1, %v836_v12 }
  0x1c   : > { %798 = vmatprep.mubr.msk.bf16.mxu1 %vm311_vm1, %v837_v13 }
  0x22   : > { %783 = vmatmul.mubr.msk.bf16.gmra.mrb[8].mxu0 %vm311_vm1, %v830_v14 }
  0x23   : > { %786 = vmatprep.mubr.msk.bf16.mxu0 %vm311_vm1, %v831_v15  ;;  %799 = vmatmul.mubr.msk.bf16.gmra.mrb[8].mxu1 %vm311_vm1, %v838_v16 }
  0x24   : > { %802 = vmatprep.mubr.msk.bf16.mxu1 %vm311_vm1, %v839_v17 }
  0x2a   : > { %787 = vmatmul.mubr.msk.bf16.gmra.mrb[12].mxu0 %vm311_vm1, %v832_v18 }
  0x2b   : > { %803 = vmatmul.mubr.msk.bf16.gmra.mrb[12].mxu1 %vm311_vm1, %v840_v19 }
  0xe5   : > { %v776_v20 = vpop.f32.mrb[0].mxu0 }
  0xe6   : > { %v398_v21 = vpop.f32.mrb[1].mxu0  ;;  %v926_v27 = vpop.f32.mrb[0].mxu1  ;;  %v565_v28 = vmul.f32 %v776_v20, %v776_v20 }
  0xe7   : > { %v777_v22 = vpop.f32.mrb[2].mxu0  ;;  %v563_v24 = vmul.f32 %v398_v21, %v398_v21  ;;  %v928_v31 = vpop.f32.mrb[1].mxu1 }
  0xe8   : > { %v401_v23 = vpop.f32.mrb[3].mxu0  ;;  %v930_v32 = vpop.f32.mrb[2].mxu1  ;;  %v566_v33 = vmul.f32 %v777_v22, %v777_v22 }
  0xe9   : > { %v525_v25 = vadd.f32 %v401_v23, %v398_v21  ;;  %v564_v26 = vmul.f32 %v401_v23, %v401_v23  ;;  %v932_v37 = vpop.f32.mrb[3].mxu1 }
  0xeb   : > { %v526_v29 = vadd.f32 %v776_v20, %v525_v25  ;;  %v595_v30 = vadd.f32 %v564_v26, %v563_v24 }
  0xed   : > { %v596_v34 = vadd.f32 %v595_v30, %v565_v28  ;;  %v780_v35 = vpop.f32.mrb[4].mxu0  ;;  %v527_v36 = vadd.f32 %v777_v22, %v526_v29 }
  0xee   : > { %v414_v38 = vpop.f32.mrb[5].mxu0  ;;  %v934_v47 = vpop.f32.mrb[4].mxu1  ;;  %v569_v48 = vmul.f32 %v780_v35, %v780_v35 }
  0xef   : > { %v528_v39 = vadd.f32 %v527_v36, %v414_v38  ;;  %v567_v40 = vmul.f32 %v414_v38, %v414_v38  ;;  %v597_v41 = vadd.f32 %v596_v34, %v566_v33  ;;  %v781_v42 = vpop.f32.mrb[6].mxu0  ;;  %v478_v51 = vpop.f32.mrb[5].mxu1 }
  0xf0   : > { %v417_v43 = vpop.f32.mrb[7].mxu0  ;;  %v936_v52 = vpop.f32.mrb[6].mxu1  ;;  %v570_v53 = vmul.f32 %v781_v42, %v781_v42 }
  0xf1   : > { %v598_v44 = vadd.f32 %v597_v41, %v567_v40  ;;  %v529_v45 = vadd.f32 %v528_v39, %v417_v43  ;;  %v568_v46 = vmul.f32 %v417_v43, %v417_v43  ;;  %v481_v57 = vpop.f32.mrb[7].mxu1  ;;  %v581_v43 = vmul.f32 %v926_v27, %v926_v27 }
  0xf3   : > { %v530_v49 = vadd.f32 %v780_v35, %v529_v45  ;;  %v599_v50 = vadd.f32 %v598_v44, %v568_v46  ;;  %v579_v35 = vmul.f32 %v928_v31, %v928_v31  ;;  %v582_v46 = vmul.f32 %v930_v32, %v930_v32 }
  0xf5   : > { %v600_v54 = vadd.f32 %v599_v50, %v569_v48  ;;  %v784_v55 = vpop.f32.mrb[8].mxu0  ;;  %v531_v56 = vadd.f32 %v781_v42, %v530_v49  ;;  %v580_v42 = vmul.f32 %v932_v37, %v932_v37 }
  0xf6   : > { %v430_v58 = vpop.f32.mrb[9].mxu0  ;;  %v800_v3 = vpop.f32.mrb[8].mxu1  ;;  %v573_v4 = vmul.f32 %v784_v55, %v784_v55 }
  0xf7   : > { %v532_v59 = vadd.f32 %v531_v56, %v430_v58  ;;  %v571_v60 = vmul.f32 %v430_v58, %v430_v58  ;;  %v601_v61 = vadd.f32 %v600_v54, %v570_v53  ;;  %v785_v62 = vpop.f32.mrb[10].mxu0  ;;  %v494_v7 = vpop.f32.mrb[9].mxu1  ;;  %v584_v56 = vmul.f32 %v481_v57, %v481_v57 }
  0xf8   : > { %v433_v63 = vpop.f32.mrb[11].mxu0  ;;  %v801_v8 = vpop.f32.mrb[10].mxu1  ;;  %v574_v9 = vmul.f32 %v785_v62, %v785_v62 }
  0xf9   : > { %v602_v0 = vadd.f32 %v601_v61, %v571_v60  ;;  %v533_v1 = vadd.f32 %v532_v59, %v433_v63  ;;  %v572_v2 = vmul.f32 %v433_v63, %v433_v63  ;;  %v497_v13 = vpop.f32.mrb[11].mxu1 }
  0xfb   : > { %v534_v5 = vadd.f32 %v784_v55, %v533_v1  ;;  %v603_v6 = vadd.f32 %v602_v0, %v572_v2  ;;  %v588_v1 = vmul.f32 %v497_v13, %v497_v13  ;;  %v589_v2 = vmul.f32 %v800_v3, %v800_v3 }
  0xfd   : > { %v604_v10 = vadd.f32 %v603_v6, %v573_v4  ;;  %v788_v11 = vpop.f32.mrb[12].mxu0  ;;  %v535_v12 = vadd.f32 %v785_v62, %v534_v5  ;;  %v587_v62 = vmul.f32 %v494_v7, %v494_v7  ;;  %v590_v5 = vmul.f32 %v801_v8, %v801_v8 }
  0xfe   : > { %v446_v14 = vpop.f32.mrb[13].mxu0  ;;  %v804_v23 = vpop.f32.mrb[12].mxu1  ;;  %v577_v24 = vmul.f32 %v788_v11, %v788_v11 }
  0xff   : > { %v536_v15 = vadd.f32 %v535_v12, %v446_v14  ;;  %v575_v16 = vmul.f32 %v446_v14, %v446_v14  ;;  %v605_v17 = vadd.f32 %v604_v10, %v574_v9  ;;  %v789_v18 = vpop.f32.mrb[14].mxu0  ;;  %v510_v28 = vpop.f32.mrb[13].mxu1 }
 0x100   : > { %v449_v19 = vpop.f32.mrb[15].mxu0  ;;  %v805_v29 = vpop.f32.mrb[14].mxu1  ;;  %v578_v30 = vmul.f32 %v789_v18, %v789_v18  ;;  %v591_v9 = vmul.f32 %v510_v28, %v510_v28 }
 0x101   : > { %v606_v20 = vadd.f32 %v605_v17, %v575_v16  ;;  %v537_v21 = vadd.f32 %v536_v15, %v449_v19  ;;  %v576_v22 = vmul.f32 %v449_v19, %v449_v19  ;;  %v513_v36 = vpop.f32.mrb[15].mxu1  ;;  %v593_v15 = vmul.f32 %v804_v23, %v804_v23 }
 0x102   : > { %v594_v17 = vmul.f32 %v805_v29, %v805_v29 }
 0x103   : > { %v538_v25 = vadd.f32 %v788_v11, %v537_v21  ;;  %v607_v26 = vadd.f32 %v606_v20, %v576_v22 }
 0x105   : > { %v608_v33 = vadd.f32 %v607_v26, %v577_v24  ;;  %v539_v34 = vadd.f32 %v789_v18, %v538_v25 }
 0x107   : > { %v540_v38 = vadd.f32 %v539_v34, %v928_v31  ;;  %v609_v39 = vadd.f32 %v608_v33, %v578_v30  ;;  %v583_v31 = vmul.f32 %v478_v51, %v478_v51 }
 0x109   : > { %v610_v40 = vadd.f32 %v609_v39, %v579_v35  ;;  %v541_v41 = vadd.f32 %v540_v38, %v932_v37  ;;  %v585_v37 = vmul.f32 %v934_v47, %v934_v47 }
 0x10b   : > { %v542_v44 = vadd.f32 %v926_v27, %v541_v41  ;;  %v611_v45 = vadd.f32 %v610_v40, %v580_v42  ;;  %v586_v27 = vmul.f32 %v936_v52, %v936_v52 }
 0x10d   : > { %v612_v48 = vadd.f32 %v611_v45, %v581_v43  ;;  %v543_v49 = vadd.f32 %v930_v32, %v542_v44 }
 0x10f   : > { %v544_v50 = vadd.f32 %v543_v49, %v478_v51  ;;  %v613_v53 = vadd.f32 %v612_v48, %v582_v46 }
 0x111   : > { %v614_v54 = vadd.f32 %v613_v53, %v583_v31  ;;  %v545_v55 = vadd.f32 %v544_v50, %v481_v57 }
 0x113   : > { %v546_v58 = vadd.f32 %v934_v47, %v545_v55  ;;  %v615_v59 = vadd.f32 %v614_v54, %v584_v56 }
 0x115   : > { %v616_v60 = vadd.f32 %v615_v59, %v585_v37  ;;  %v547_v61 = vadd.f32 %v936_v52, %v546_v58  ;;  %v592_v52 = vmul.f32 %v513_v36, %v513_v36 }
 0x117   : > { %v548_v32 = vadd.f32 %v547_v61, %v494_v7  ;;  %v617_v63 = vadd.f32 %v616_v60, %v586_v27 }
 0x119   : > { %v618_v51 = vadd.f32 %v617_v63, %v587_v62  ;;  %v549_v0 = vadd.f32 %v548_v32, %v497_v13 }
 0x11b   : > { %v550_v57 = vadd.f32 %v800_v3, %v549_v0  ;;  %v619_v4 = vadd.f32 %v618_v51, %v588_v1 }
 0x11d   : > { %v620_v6 = vadd.f32 %v619_v4, %v589_v2  ;;  %v551_v47 = vadd.f32 %v801_v8, %v550_v57 }
 0x11f   : > { %v552_v10 = vadd.f32 %v551_v47, %v510_v28  ;;  %v621_v11 = vadd.f32 %v620_v6, %v590_v5 }
 0x121   : > { %v622_v12 = vadd.f32 %v621_v11, %v591_v9  ;;  %v553_v14 = vadd.f32 %v552_v10, %v513_v36 }
 0x123   : > { %v554_v7 = vadd.f32 %v804_v23, %v553_v14  ;;  %v623_v16 = vadd.f32 %v622_v12, %v592_v52 }
 0x125   : > { %v555_v18 = vadd.f32 %v805_v29, %v554_v7  ;;  %v624_v13 = vadd.f32 %v623_v16, %v593_v15 }
 0x127   : > { %v556_v19 = vrot.slane %v555_v18, 4  ;;  %v625_v3 = vadd.f32 %v624_v13, %v594_v17 }
 0x129   : > { %v557_v20 = vadd.f32 %v556_v19, %v555_v18  ;;  %v626_v21 = vrot.slane %v625_v3, 4 }
 0x12b   : > { %v558_v22 = vrot.slane %v557_v20, 2  ;;  %v627_v8 = vadd.f32 %v626_v21, %v625_v3 }
 0x12d   : > { %v559_v24 = vadd.f32 %v558_v22, %v557_v20  ;;  %v628_v25 = vrot.slane %v627_v8, 2 }
 0x12f   : > { %v560_v26 = vrot.slane %v559_v24, 1  ;;  %v629_v28 = vadd.f32 %v628_v25, %v627_v8 }
 0x131   : > { %v561_v23 = vadd.f32 %v560_v26, %v559_v24  ;;  %v630_v30 = vrot.slane %v629_v28, 1 }
 0x133   : > { %562 = vst [vmem:[%s174_s27] sm:$0x1] %v561_v23  ;;  %v631_v29 = vadd.f32 %v630_v30, %v629_v28 }
 0x135   : > { %632 = vst [vmem:[%s177_s30] sm:$0x1] %v631_v29 }
 0x136 PF: > { %s14_s12 = sadd.s32 1, %s847_s12  }
 0x137   : > { %p11_p5 = scmp.ge.s32.totalorder %s14_s12, 4  }
 0x139   :  { %13 = sbr.rel (!%p11_p5) target bundleno = 1 (0x1), region = 70 }

// kernel: conv_bn_act.3
= control target key start
LH: loop header
LB: loop body
LE: loop exit
PB: predicated region body
PF: predicated region fallthrough
CT: control target
= control target key end

     0   :  { %s1494_s15 = smov 0   ;;  %s1814_s0 = inlined_call_operand.vmem [shape: bf16[512,36], index: 0, kind: input, shape index: {}]   ;;  %s1815_s1 = inlined_call_operand.vmem [shape: bf16[36,128], index: 1, kind: input, shape index: {}]   ;;  %s1816_s2 = inlined_call_operand.vmem [shape: f32[1,128], index: 2, kind: input, shape index: {}]   ;;  %s1817_s3 = inlined_call_operand.vmem [shape: f32[1,128], index: 3, kind: input, shape index: {}]   ;;  %s1818_s4 = inlined_call_operand.vmem [shape: bf16[512,128], index: 4, kind: output, shape index: {}]  }
   0x1 LB: > { %s1034_s16 = sadd.s32 4294967295, %s1467_s15   ;;  %p1038_p0 = scmp.ge.s32.totalorder %s1467_s15, 1  ;;  %s1467_s15 = sphi %s1494_s15, %s14_s15  }
   0x2   : > { %p163_p1 = scmp.lt.s32.totalorder %s1467_s15, 3 }
   0x4   : > { %p164_p2 = pnand %p1038_p0, %p163_p1 }
   0x5   : > { %v1314_v0 = vld [vmem:[%s1815_s1] sm:$0xff] (!%p164_p2)   ;;  %v1315_v1 = vld [vmem:[%s1815_s1 + $0x8] sm:$0xff] (!%p164_p2)   ;;  %s1039_s21 = sshll.u32 (!%p164_p2), %s1034_s16, 5  ;;  %v1316_v2 = vld [vmem:[%s1815_s1 + $0x10] ss:$0 sps:$4 sm:$0x33] (!%p164_p2)  }
   0x6   : > { %167 = sbr.rel (%p164_p2) target bundleno = 325 (0x145), region = 36  ;;  %1260 = vmatprep.subr.bf16.mxu0 (!%p164_p2), %v1314_v0  ;;  %1298 = vmatprep.subr.bf16.mxu1 (!%p164_p2), %v1314_v0  ;;  %p190_p3 = scmp.lt.s32.totalorder (!%p164_p2), %s1039_s21, 63  ;;  %vm383_vm0 = vcmask (!%p164_p2), 1041408   ;;  %vm334_vm1 = vcmask (!%p164_p2), 293888   ;;  %v1556_v20 = vld [vmem:[%s1816_s2] ss:$0 sm:$0xff] (!%p164_p2) }
   0x7   : > { %1261 = vmatpush3.bf16.msra.mxu0 (!%p164_p2), %v1314_v0  ;;  %1301 = vmatpush3.bf16.msra.mxu1 (!%p164_p2), %v1314_v0  ;;  %v385_v3 = vsel (!%p164_p2), %vm383_vm0, %v1316_v2, 0  ;;  %v1561_v22 = vld [vmem:[%s1817_s3] ss:$0 sm:$0xff] (!%p164_p2) }
   0x8   : > { %1262 = vmatprep.subr.bf16.mxu0 (!%p164_p2), %v1315_v1  ;;  %1299 = vmatprep.subr.bf16.mxu1 (!%p164_p2), %v1315_v1 }
   0xb   : > { %1263 = vmatpush3.bf16.msra.mxu0 (!%p164_p2), %v1315_v1  ;;  %1302 = vmatpush3.bf16.msra.mxu1 (!%p164_p2), %v1315_v1 }
   0xc   : > { %1304 = vmatprep.subr.msk.bf16.mxu0 (!%p164_p2), %vm383_vm0, %v1316_v2  ;;  %1305 = vmatprep.subr.msk.bf16.mxu1 (!%p164_p2), %vm383_vm0, %v1316_v2 }
   0xd   : > { %s1820_s21 = smov (!%p190_p3, %s1039_s21), 63 }
   0xe   : > { %s1040_s24 = sshll.u32 %s1820_s21, 2 }
   0xf   : > { %s1519_s27 = scalar_lea.vmem %s1814_s0, %s1040_s24  ;;  %1265 = vmatpush3.bf16.msra.mxu0 %v385_v3  ;;  %1303 = vmatpush3.bf16.msra.mxu1 %v385_v3  ;;  %s1713_s8 = scalar_lea.vmem %s1818_s4, %s1040_s24 }
  0x10   : > { %v1317_v4 = vld [vmem:[%s1519_s27] sm:$0xff]   ;;  %v1319_v6 = vld [vmem:[%s1519_s27 + $0x8] sm:$0xff]   ;;  %v1321_v8 = vld [vmem:[%s1519_s27 + $0x10] sm:$0xff]  }
  0x11   : > { %v1318_v5 = vld [vmem:[%s1519_s27 + $0x40] sm:$0xff]   ;;  %1266 = vmatprep.mubr.msk.bf16.mxu0 %vm334_vm1, %v1317_v4  ;;  %v1320_v7 = vld [vmem:[%s1519_s27 + $0x48] sm:$0xff]   ;;  %v1322_v9 = vld [vmem:[%s1519_s27 + $0x50] sm:$0xff]  }
  0x12   : > { %1282 = vmatprep.mubr.msk.bf16.mxu1 %vm334_vm1, %v1318_v5  ;;  %1267 = vmatmul.mubr.msk.bf16.vlgmr.msra.gmra.mrb[0].mxu0 %vm334_vm1, %v1319_v6  ;;  %v1323_v10 = vld [vmem:[%s1519_s27 + $0x18] sm:$0xff]   ;;  %v1325_v12 = vld [vmem:[%s1519_s27 + $0x20] sm:$0xff]   ;;  %v1327_v14 = vld [vmem:[%s1519_s27 + $0x28] sm:$0xff]  }
  0x13   : > { %1283 = vmatmul.mubr.msk.bf16.vlgmr.msra.gmra.mrb[0].mxu1 %vm334_vm1, %v1320_v7  ;;  %1270 = vmatprep.mubr.msk.bf16.mxu0 %vm334_vm1, %v1321_v8  ;;  %v1324_v11 = vld [vmem:[%s1519_s27 + $0x58] sm:$0xff]   ;;  %v1326_v13 = vld [vmem:[%s1519_s27 + $0x60] sm:$0xff]   ;;  %v1328_v15 = vld [vmem:[%s1519_s27 + $0x68] sm:$0xff]  }
  0x14   : > { %1286 = vmatprep.mubr.msk.bf16.mxu1 %vm334_vm1, %v1322_v9  ;;  %v1329_v16 = vld [vmem:[%s1519_s27 + $0x30] sm:$0xff]   ;;  %v1331_v18 = vld [vmem:[%s1519_s27 + $0x38] sm:$0xff]  }
  0x15   : > { %v1330_v17 = vld [vmem:[%s1519_s27 + $0x70] sm:$0xff]   ;;  %v1332_v19 = vld [vmem:[%s1519_s27 + $0x78] sm:$0xff]  }
  0x1a   : > { %1271 = vmatmul.mubr.msk.bf16.gmra.mrb[4].mxu0 %vm334_vm1, %v1323_v10 }
  0x1b   : > { %1287 = vmatmul.mubr.msk.bf16.gmra.mrb[4].mxu1 %vm334_vm1, %v1324_v11  ;;  %1274 = vmatprep.mubr.msk.bf16.mxu0 %vm334_vm1, %v1325_v12 }
  0x1c   : > { %1290 = vmatprep.mubr.msk.bf16.mxu1 %vm334_vm1, %v1326_v13 }
  0x22   : > { %1275 = vmatmul.mubr.msk.bf16.gmra.mrb[8].mxu0 %vm334_vm1, %v1327_v14 }
  0x23   : > { %1291 = vmatmul.mubr.msk.bf16.gmra.mrb[8].mxu1 %vm334_vm1, %v1328_v15  ;;  %1278 = vmatprep.mubr.msk.bf16.mxu0 %vm334_vm1, %v1329_v16 }
  0x24   : > { %1294 = vmatprep.mubr.msk.bf16.mxu1 %vm334_vm1, %v1330_v17 }
  0x2a   : > { %1279 = vmatmul.mubr.msk.bf16.gmra.mrb[12].mxu0 %vm334_vm1, %v1331_v18 }
  0x2b   : > { %1295 = vmatmul.mubr.msk.bf16.gmra.mrb[12].mxu1 %vm334_vm1, %v1332_v19 }
  0xe5   : > { %v1268_v21 = vpop.f32.mrb[0].mxu0 }
  0xe6   : > { %v1284_v23 = vpop.f32.mrb[0].mxu1  ;;  %v557_v24 = vmul.f32 %v1268_v21, %v1556_v20  ;;  %v421_v26 = vpop.f32.mrb[1].mxu0 }
  0xe7   : > { %v573_v25 = vmul.f32 %v1284_v23, %v1556_v20  ;;  %v485_v27 = vpop.f32.mrb[1].mxu1  ;;  %v555_v28 = vmul.f32 %v1556_v20, %v421_v26  ;;  %v1269_v30 = vpop.f32.mrb[2].mxu0 }
  0xe8   : > { %v571_v29 = vmul.f32 %v1556_v20, %v485_v27  ;;  %v1285_v31 = vpop.f32.mrb[2].mxu1  ;;  %v1568_v32 = vadd.f32 %v1561_v22, %v557_v24  ;;  %v558_v34 = vmul.f32 %v1269_v30, %v1556_v20  ;;  %v424_v36 = vpop.f32.mrb[3].mxu0 }
  0xe9   : > { %v1571_v33 = vadd.f32 %v1561_v22, %v573_v25  ;;  %v574_v35 = vmul.f32 %v1285_v31, %v1556_v20  ;;  %v488_v37 = vpop.f32.mrb[3].mxu1  ;;  %v1576_v38 = vadd.f32 %v1561_v22, %v555_v28  ;;  %v556_v40 = vmul.f32 %v1556_v20, %v424_v36 }
  0xea   : > { %v1579_v39 = vadd.f32 %v1561_v22, %v571_v29  ;;  %v572_v41 = vmul.f32 %v1556_v20, %v488_v37  ;;  %v628_v42 = vsub.f32 0.0, %v1568_v32  ;;  %v1586_v44 = vadd.f32 %v1561_v22, %v558_v34 }
  0xeb   : > { %v644_v43 = vsub.f32 0.0, %v1571_v33  ;;  %v1589_v45 = vadd.f32 %v1561_v22, %v574_v35  ;;  %v626_v46 = vsub.f32 0.0, %v1576_v38  ;;  %v1594_v48 = vadd.f32 %v1561_v22, %v556_v40 }
  0xec   : > { %v642_v47 = vsub.f32 0.0, %v1579_v39  ;;  %v1597_v49 = vadd.f32 %v1561_v22, %v572_v41  ;;  %v662_v50 = vmul.f32 1.442695, %v628_v42  ;;  %v629_v52 = vsub.f32 0.0, %v1586_v44 }
  0xed   : > { %v694_v51 = vmul.f32 1.442695, %v644_v43  ;;  %v645_v53 = vsub.f32 0.0, %v1589_v45  ;;  %v658_v54 = vmul.f32 1.442695, %v626_v46  ;;  %v627_v56 = vsub.f32 0.0, %v1594_v48 }
  0xee   : > { %v690_v55 = vmul.f32 1.442695, %v642_v47  ;;  %v643_v57 = vsub.f32 0.0, %v1597_v49  ;;  %1333 = vpow2.f32 %v662_v50  ;;  %v664_v58 = vmul.f32 1.442695, %v629_v52  ;;  %v1272_v60 = vpop.f32.mrb[4].mxu0 }
  0xef   : > { %v696_v59 = vmul.f32 1.442695, %v645_v53  ;;  %v1288_v61 = vpop.f32.mrb[4].mxu1  ;;  %1335 = vpow2.f32 %v694_v51  ;;  %v660_v62 = vmul.f32 1.442695, %v627_v56  ;;  %v561_v0 = vmul.f32 %v1272_v60, %v1556_v20  ;;  %v437_v1 = vpop.f32.mrb[5].mxu0 }
  0xf0   : > { %v692_v63 = vmul.f32 1.442695, %v643_v57  ;;  %v501_v2 = vpop.f32.mrb[5].mxu1  ;;  %1337 = vpow2.f32 %v658_v54  ;;  %v577_v3 = vmul.f32 %v1288_v61, %v1556_v20  ;;  %v559_v4 = vmul.f32 %v1556_v20, %v437_v1  ;;  %v1273_v6 = vpop.f32.mrb[6].mxu0 }
  0xf1   : > { %v575_v5 = vmul.f32 %v1556_v20, %v501_v2  ;;  %v1289_v7 = vpop.f32.mrb[6].mxu1  ;;  %1339 = vpow2.f32 %v690_v55  ;;  %v1608_v8 = vadd.f32 %v1561_v22, %v561_v0  ;;  %v562_v9 = vmul.f32 %v1273_v6, %v1556_v20  ;;  %v440_v11 = vpop.f32.mrb[7].mxu0 }
  0xf2   : > { %v578_v10 = vmul.f32 %v1289_v7, %v1556_v20  ;;  %v504_v12 = vpop.f32.mrb[7].mxu1  ;;  %1341 = vpow2.f32 %v664_v58  ;;  %v1613_v13 = vadd.f32 %v1561_v22, %v577_v3  ;;  %v1616_v14 = vadd.f32 %v1561_v22, %v559_v4 }
  0xf3   : > { %v1619_v15 = vadd.f32 %v1561_v22, %v575_v5  ;;  %1343 = vpow2.f32 %v696_v59  ;;  %v632_v16 = vsub.f32 0.0, %v1608_v8  ;;  %v1623_v17 = vadd.f32 %v1561_v22, %v562_v9 }
  0xf4   : > { %1345 = vpow2.f32 %v660_v62  ;;  %v648_v18 = vsub.f32 0.0, %v1613_v13  ;;  %v630_v19 = vsub.f32 0.0, %v1616_v14  ;;  %v1629_v24 = vadd.f32 %v1561_v22, %v578_v10 }
  0xf5   : > { %v646_v21 = vsub.f32 0.0, %v1619_v15  ;;  %1347 = vpow2.f32 %v692_v63  ;;  %v670_v23 = vmul.f32 1.442695, %v632_v16  ;;  %v1276_v25 = vpop.f32.mrb[8].mxu0  ;;  %v560_v30 = vmul.f32 %v1556_v20, %v440_v11 }
  0xf6   : > { %v1292_v26 = vpop.f32.mrb[8].mxu1  ;;  %v702_v27 = vmul.f32 1.442695, %v648_v18  ;;  %v666_v28 = vmul.f32 1.442695, %v630_v19  ;;  %v633_v31 = vsub.f32 0.0, %v1623_v17  ;;  %v576_v34 = vmul.f32 %v1556_v20, %v504_v12 }
  0xf7   : > { %v698_v29 = vmul.f32 1.442695, %v646_v21  ;;  %1349 = vpow2.f32 %v670_v23  ;;  %v453_v35 = vpop.f32.mrb[9].mxu0  ;;  %v517_v36 = vpop.f32.mrb[9].mxu1  ;;  %v1635_v40 = vadd.f32 %v1561_v22, %v560_v30  ;;  %v565_v41 = vmul.f32 %v1276_v25, %v1556_v20 }
  0xf8   : > { %v1334_v37 = vpop.eup %1333  ;;  %1351 = vpow2.f32 %v702_v27  ;;  %v581_v42 = vmul.f32 %v1292_v26, %v1556_v20  ;;  %v1277_v43 = vpop.f32.mrb[10].mxu0  ;;  %v649_v51 = vsub.f32 0.0, %v1629_v24  ;;  %v1641_v52 = vadd.f32 %v1561_v22, %v576_v34 }
  0xf9   : > { %v1293_v46 = vpop.f32.mrb[10].mxu1  ;;  %v1336_v47 = vpop.eup %1335  ;;  %v724_v50 = vadd.f32 1.0, %v1334_v37  ;;  %1353 = vpow2.f32 %v666_v28  ;;  %v631_v57 = vsub.f32 0.0, %v1635_v40  ;;  %v563_v58 = vmul.f32 %v1556_v20, %v453_v35 }
  0xfa   : > { %v456_v53 = vpop.f32.mrb[11].mxu0  ;;  %v1643_v54 = vpop.f32.mrb[11].mxu1  ;;  %v740_v56 = vadd.f32 1.0, %v1336_v47  ;;  %1355 = vpow2.f32 %v698_v29  ;;  %v1648_v61 = vadd.f32 %v1561_v22, %v565_v41  ;;  %v672_v0 = vmul.f32 1.442695, %v633_v31 }
  0xfb   : > { %v1338_v55 = vpop.eup %1337  ;;  %1357 = vrcp.f32 %v724_v50  ;;  %v1651_v1 = vadd.f32 %v1561_v22, %v581_v42  ;;  %v704_v4 = vmul.f32 1.442695, %v649_v51  ;;  %v647_v5 = vsub.f32 0.0, %v1641_v52 }
  0xfc   : > { %v1340_v59 = vpop.eup %1339  ;;  %v722_v60 = vadd.f32 1.0, %v1338_v55  ;;  %1359 = vrcp.f32 %v740_v56  ;;  %v668_v11 = vmul.f32 1.442695, %v631_v57  ;;  %v1657_v12 = vadd.f32 %v1561_v22, %v563_v58 }
  0xfd   : > { %v1342_v62 = vpop.eup %1341  ;;  %v738_v63 = vadd.f32 1.0, %v1340_v59  ;;  %v1280_v6 = vpop.f32.mrb[12].mxu0  ;;  %v636_v23 = vsub.f32 0.0, %v1648_v61  ;;  %v579_v25 = vmul.f32 %v1556_v20, %v517_v36  ;;  %v652_v29 = vsub.f32 0.0, %v1651_v1 }
  0xfe   : > { %v1344_v2 = vpop.eup %1343  ;;  %1361 = vrcp.f32 %v722_v60  ;;  %v725_v3 = vadd.f32 1.0, %v1342_v62  ;;  %v1654_v7 = vpop.f32.mrb[12].mxu1  ;;  %v566_v30 = vmul.f32 %v1277_v43, %v1556_v20  ;;  %v582_v36 = vmul.f32 %v1293_v46, %v1556_v20 }
  0xff   : > { %v1346_v9 = vpop.eup %1345  ;;  %1363 = vrcp.f32 %v738_v63  ;;  %v741_v10 = vadd.f32 1.0, %v1344_v2  ;;  %v1659_v16 = vpop.f32.mrb[13].mxu0  ;;  %v1676_v37 = vadd.f32 %v1561_v22, %v579_v25  ;;  %v564_v41 = vmul.f32 %v1556_v20, %v456_v53 }
 0x100   : > { %v1661_v18 = vpop.f32.mrb[13].mxu1  ;;  %v1348_v19 = vpop.eup %1347  ;;  %1365 = vrcp.f32 %v725_v3  ;;  %v723_v21 = vadd.f32 1.0, %v1346_v9  ;;  %v634_v50 = vsub.f32 0.0, %v1657_v12  ;;  %v1682_v43 = vadd.f32 %v1561_v22, %v566_v30 }
 0x101   : > { %v1665_v26 = vpop.f32.mrb[14].mxu0  ;;  %v1667_v27 = vpop.f32.mrb[14].mxu1  ;;  %1367 = vrcp.f32 %v741_v10  ;;  %v739_v28 = vadd.f32 1.0, %v1348_v19  ;;  %v650_v56 = vsub.f32 0.0, %v1676_v37  ;;  %v1686_v57 = vadd.f32 %v1561_v22, %v582_v36 }
 0x102   : > { %v1671_v31 = vpop.f32.mrb[15].mxu0  ;;  %v1673_v34 = vpop.f32.mrb[15].mxu1  ;;  %1369 = vrcp.f32 %v723_v21  ;;  %v637_v53 = vsub.f32 0.0, %v1682_v43  ;;  %v1690_v59 = vadd.f32 %v1561_v22, %v564_v41  ;;  %v700_v63 = vmul.f32 1.442695, %v647_v5 }
 0x103   : > { %v1350_v35 = vpop.eup %1349  ;;  %1371 = vrcp.f32 %v739_v28  ;;  %v653_v2 = vsub.f32 0.0, %v1686_v57  ;;  %v678_v3 = vmul.f32 1.442695, %v636_v23  ;;  %v710_v9 = vmul.f32 1.442695, %v652_v29 }
 0x104   : > { %v1352_v42 = vpop.eup %1351  ;;  %v728_v47 = vadd.f32 1.0, %v1350_v35  ;;  %1373 = vpow2.f32 %v672_v0  ;;  %v674_v10 = vmul.f32 1.442695, %v634_v50  ;;  %v706_v25 = vmul.f32 1.442695, %v650_v56 }
 0x105   : > { %v1354_v51 = vpop.eup %1353  ;;  %v744_v55 = vadd.f32 1.0, %v1352_v42  ;;  %v580_v28 = vmul.f32 %v1556_v20, %v1643_v54  ;;  %v680_v35 = vmul.f32 1.442695, %v637_v53  ;;  %v635_v5 = vsub.f32 0.0, %v1690_v59 }
 0x106   : > { %v1356_v58 = vpop.eup %1355  ;;  %1375 = vrcp.f32 %v728_v47  ;;  %v726_v46 = vadd.f32 1.0, %v1354_v51  ;;  %v569_v36 = vmul.f32 %v1280_v6, %v1556_v20  ;;  %v712_v29 = vmul.f32 1.442695, %v653_v2 }
 0x107   : > { %v1358_v60 = vpop.eup %1357  ;;  %1377 = vrcp.f32 %v744_v55  ;;  %v742_v62 = vadd.f32 1.0, %v1356_v58 }
 0x108   : > { %v1360_v0 = vpop.eup %1359  ;;  %1379 = vrcp.f32 %v726_v46  ;;  %v788_v21 = vmul.f32 %v1358_v60, %v1568_v32  ;;  %v1700_v32 = vadd.f32 %v1561_v22, %v580_v28 }
 0x109   : > { %v1362_v19 = vpop.eup %1361  ;;  %1381 = vrcp.f32 %v742_v62  ;;  %v804_v23 = vmul.f32 %v1360_v0, %v1571_v33  ;;  %v676_v62 = vmul.f32 1.442695, %v635_v5 }
 0x10a   : > { %v1364_v30 = vpop.eup %1363  ;;  %1383 = vpow2.f32 %v704_v4  ;;  %v786_v47 = vmul.f32 %v1362_v19, %v1576_v38  ;;  %v1705_v4 = vadd.f32 %v1561_v22, %v569_v36  ;;  %v651_v38 = vsub.f32 0.0, %v1700_v32 }
 0x10b   : > { %v1366_v41 = vpop.eup %1365  ;;  %1385 = vpow2.f32 %v668_v11  ;;  %v802_v6 = vmul.f32 %v1364_v30, %v1579_v39 }
 0x10c   : > { %v1368_v42 = vpop.eup %1367  ;;  %v789_v54 = vmul.f32 %v1366_v41, %v1586_v44  ;;  %1387 = vpow2.f32 %v700_v63  ;;  %v640_v39 = vsub.f32 0.0, %v1705_v4  ;;  %v708_v2 = vmul.f32 1.442695, %v651_v38 }
 0x10d   : > { %v1370_v50 = vpop.eup %1369  ;;  %v805_v33 = vmul.f32 %v1368_v42, %v1589_v45  ;;  %1389 = vpow2.f32 %v678_v3  ;;  %v585_v45 = vmul.f32 %v1654_v7, %v1556_v20  ;;  %v584_v38 = vmul.f32 %v1556_v20, %v1673_v34 }
 0x10e   : > { %v1372_v44 = vpop.eup %1371  ;;  %v1154_v11 = vpack.c.bf16 %v789_v54, %v788_v21  ;;  %v787_v51 = vmul.f32 %v1370_v50, %v1594_v48  ;;  %1391 = vpow2.f32 %v710_v9 }
 0x10f   : > { %v1374_v55 = vpop.eup %1373  ;;  %v1194_v56 = vpack.c.bf16 %v805_v33, %v804_v23  ;;  %v803_v58 = vmul.f32 %v1372_v44, %v1597_v49  ;;  %1393 = vpow2.f32 %v674_v10  ;;  %v686_v49 = vmul.f32 1.442695, %v640_v39 }
 0x110   : > { %v1376_v46 = vpop.eup %1375  ;;  %1226 = vst [vmem:[%s1713_s8 + $0x8] sm:$0xff] %v1154_v11   ;;  %v1149_v53 = vpack.c.bf16 %v787_v51, %v786_v47  ;;  %v729_v60 = vadd.f32 1.0, %v1374_v55  ;;  %1395 = vpow2.f32 %v706_v25  ;;  %v1733_v7 = vadd.f32 %v1561_v22, %v585_v45 }
 0x111   : > { %v1723_v48 = vpop.eup %1377  ;;  %1234 = vst [vmem:[%s1713_s8 + $0x48] sm:$0xff] %v1194_v56   ;;  %v1189_v63 = vpack.c.bf16 %v803_v58, %v802_v6  ;;  %1397 = vpow2.f32 %v680_v35  ;;  %v567_v10 = vmul.f32 %v1556_v20, %v1659_v16  ;;  %v583_v25 = vmul.f32 %v1556_v20, %v1661_v18 }
 0x112   : > { %v1726_v0 = vpop.eup %1379  ;;  %1150 = vst [vmem:[%s1713_s8] sm:$0xff] %v1149_v53   ;;  %1399 = vrcp.f32 %v729_v60  ;;  %v570_v35 = vmul.f32 %v1665_v26, %v1556_v20  ;;  %v656_v41 = vsub.f32 0.0, %v1733_v7  ;;  %v586_v16 = vmul.f32 %v1667_v27, %v1556_v20 }
 0x113   : > { %v1729_v3 = vpop.eup %1381  ;;  %1233 = vst [vmem:[%s1713_s8 + $0x40] sm:$0xff] %v1189_v63   ;;  %1401 = vpow2.f32 %v712_v29  ;;  %v1745_v42 = vadd.f32 %v1561_v22, %v567_v10  ;;  %v568_v18 = vmul.f32 %v1556_v20, %v1671_v31  ;;  %v792_v26 = vmul.f32 %v1376_v46, %v1608_v8 }
 0x114   : > { %v1384_v9 = vpop.eup %1383  ;;  %1403 = vpow2.f32 %v676_v62  ;;  %v1751_v50 = vadd.f32 %v1561_v22, %v583_v25  ;;  %v1754_v33 = vadd.f32 %v1561_v22, %v570_v35  ;;  %v718_v11 = vmul.f32 1.442695, %v656_v41 }
 0x115   : > { %v1386_v19 = vpop.eup %1385  ;;  %v745_v21 = vadd.f32 1.0, %v1384_v9  ;;  %1405 = vpow2.f32 %v708_v2  ;;  %v1759_v8 = vadd.f32 %v1561_v22, %v586_v16  ;;  %v638_v55 = vsub.f32 0.0, %v1745_v42 }
 0x116   : > { %v1388_v28 = vpop.eup %1387  ;;  %v727_v30 = vadd.f32 1.0, %v1386_v19  ;;  %1407 = vpow2.f32 %v686_v49  ;;  %v1763_v56 = vadd.f32 %v1561_v22, %v568_v18  ;;  %v654_v20 = vsub.f32 0.0, %v1751_v50 }
 0x117   : > { %v1390_v5 = vpop.eup %1389  ;;  %1409 = vrcp.f32 %v745_v21  ;;  %v743_v36 = vadd.f32 1.0, %v1388_v28  ;;  %v1768_v34 = vadd.f32 %v1561_v22, %v584_v38  ;;  %v641_v60 = vsub.f32 0.0, %v1754_v33 }
 0x118   : > { %v1392_v23 = vpop.eup %1391  ;;  %1411 = vrcp.f32 %v727_v30  ;;  %v732_v29 = vadd.f32 1.0, %v1390_v5  ;;  %v657_v49 = vsub.f32 0.0, %v1759_v8  ;;  %v682_v10 = vmul.f32 1.442695, %v638_v55 }
 0x119   : > { %v1394_v47 = vpop.eup %1393  ;;  %1413 = vrcp.f32 %v743_v36  ;;  %v748_v54 = vadd.f32 1.0, %v1392_v23  ;;  %v639_v19 = vsub.f32 0.0, %v1763_v56  ;;  %v714_v21 = vmul.f32 1.442695, %v654_v20 }
 0x11a   : > { %v1396_v6 = vpop.eup %1395  ;;  %1415 = vrcp.f32 %v732_v29  ;;  %v730_v27 = vadd.f32 1.0, %v1394_v47  ;;  %v655_v25 = vsub.f32 0.0, %v1768_v34  ;;  %v808_v30 = vmul.f32 %v1723_v48, %v1613_v13 }
 0x11b   : > { %v1398_v44 = vpop.eup %1397  ;;  %1417 = vrcp.f32 %v748_v54  ;;  %v746_v31 = vadd.f32 1.0, %v1396_v6  ;;  %v688_v5 = vmul.f32 1.442695, %v641_v60  ;;  %v790_v41 = vmul.f32 %v1726_v0, %v1616_v14 }
 0x11c   : > { %v1400_v51 = vpop.eup %1399  ;;  %1419 = vrcp.f32 %v730_v27  ;;  %v733_v39 = vadd.f32 1.0, %v1398_v44  ;;  %v806_v16 = vmul.f32 %v1729_v3, %v1619_v15  ;;  %v720_v29 = vmul.f32 1.442695, %v657_v49 }
 0x11d   : > { %v1402_v58 = vpop.eup %1401  ;;  %v793_v45 = vmul.f32 %v1400_v51, %v1623_v17  ;;  %1421 = vrcp.f32 %v746_v31  ;;  %v716_v54 = vmul.f32 1.442695, %v655_v25 }
 0x11e   : > { %v1404_v46 = vpop.eup %1403  ;;  %1423 = vrcp.f32 %v733_v39  ;;  %v749_v53 = vadd.f32 1.0, %v1402_v58 }
 0x11f   : > { %v1406_v62 = vpop.eup %1405  ;;  %v1164_v63 = vpack.c.bf16 %v793_v45, %v792_v26  ;;  %v731_v2 = vadd.f32 1.0, %v1404_v46  ;;  %1425 = vpow2.f32 %v718_v11 }
 0x120   : > { %v1408_v9 = vpop.eup %1407  ;;  %1427 = vrcp.f32 %v749_v53  ;;  %v747_v17 = vadd.f32 1.0, %v1406_v62 }
 0x121   : > { %v1410_v22 = vpop.eup %1409  ;;  %1228 = vst [vmem:[%s1713_s8 + $0x18] sm:$0xff] %v1164_v63   ;;  %1429 = vrcp.f32 %v731_v2  ;;  %v736_v51 = vadd.f32 1.0, %v1408_v9 }
 0x122   : > { %v1412_v28 = vpop.eup %1411  ;;  %v809_v35 = vmul.f32 %v1410_v22, %v1629_v24  ;;  %1431 = vrcp.f32 %v747_v17  ;;  %v684_v24 = vmul.f32 1.442695, %v639_v19 }
 0x123   : > { %v1414_v36 = vpop.eup %1413  ;;  %v791_v23 = vmul.f32 %v1412_v28, %v1635_v40  ;;  %1433 = vpow2.f32 %v682_v10 }
 0x124   : > { %v1416_v18 = vpop.eup %1415  ;;  %v1204_v47 = vpack.c.bf16 %v809_v35, %v808_v30  ;;  %v807_v13 = vmul.f32 %v1414_v36, %v1641_v52  ;;  %1435 = vpow2.f32 %v714_v21 }
 0x125   : > { %v1418_v48 = vpop.eup %1417  ;;  %v1159_v26 = vpack.c.bf16 %v791_v23, %v790_v41  ;;  %1437 = vpow2.f32 %v688_v5  ;;  %v796_v52 = vmul.f32 %v1416_v18, %v1648_v61 }
 0x126   : > { %v1420_v6 = vpop.eup %1419  ;;  %1236 = vst [vmem:[%s1713_s8 + $0x58] sm:$0xff] %v1204_v47   ;;  %v1199_v14 = vpack.c.bf16 %v807_v13, %v806_v16  ;;  %1439 = vpow2.f32 %v720_v29  ;;  %v812_v44 = vmul.f32 %v1418_v48, %v1651_v1 }
 0x127   : > { %v1422_v15 = vpop.eup %1421  ;;  %1227 = vst [vmem:[%s1713_s8 + $0x10] sm:$0xff] %v1159_v26   ;;  %1441 = vpow2.f32 %v684_v24  ;;  %v794_v55 = vmul.f32 %v1420_v6, %v1657_v12 }
 0x128   : > { %v1424_v40 = vpop.eup %1423  ;;  %1235 = vst [vmem:[%s1713_s8 + $0x50] sm:$0xff] %v1199_v14   ;;  %1443 = vpow2.f32 %v716_v54  ;;  %v810_v61 = vmul.f32 %v1422_v15, %v1676_v37 }
 0x129   : > { %v1426_v0 = vpop.eup %1425  ;;  %v797_v3 = vmul.f32 %v1424_v40, %v1682_v43  ;;  %1445 = vrcp.f32 %v736_v51 }
 0x12a   : > { %v1428_v27 = vpop.eup %1427  ;;  %v752_v45 = vadd.f32 1.0, %v1426_v0 }
 0x12b   : > { %v1430_v38 = vpop.eup %1429  ;;  %v1174_v31 = vpack.c.bf16 %v797_v3, %v796_v52  ;;  %v813_v11 = vmul.f32 %v1428_v27, %v1686_v57 }
 0x12c   : > { %v1432_v39 = vpop.eup %1431  ;;  %v795_v58 = vmul.f32 %v1430_v38, %v1690_v59  ;;  %1447 = vrcp.f32 %v752_v45 }
 0x12d   : > { %1230 = vst [vmem:[%s1713_s8 + $0x28] sm:$0xff] %v1174_v31   ;;  %v1214_v43 = vpack.c.bf16 %v813_v11, %v812_v44  ;;  %v811_v20 = vmul.f32 %v1432_v39, %v1700_v32  ;;  %v1434_v46 = vpop.eup %1433 }
 0x12e   : > { %v1169_v1 = vpack.c.bf16 %v795_v58, %v794_v55  ;;  %v1436_v53 = vpop.eup %1435  ;;  %v734_v60 = vadd.f32 1.0, %v1434_v46 }
 0x12f   : > { %1238 = vst [vmem:[%s1713_s8 + $0x68] sm:$0xff] %v1214_v43   ;;  %v1209_v57 = vpack.c.bf16 %v811_v20, %v810_v61  ;;  %v1438_v62 = vpop.eup %1437  ;;  %v750_v12 = vadd.f32 1.0, %v1436_v53 }
 0x130   : > { %1229 = vst [vmem:[%s1713_s8 + $0x20] sm:$0xff] %v1169_v1   ;;  %v1440_v59 = vpop.eup %1439  ;;  %1449 = vrcp.f32 %v734_v60  ;;  %v737_v37 = vadd.f32 1.0, %v1438_v62 }
 0x131   : > { %1237 = vst [vmem:[%s1713_s8 + $0x60] sm:$0xff] %v1209_v57   ;;  %v1442_v63 = vpop.eup %1441  ;;  %1451 = vrcp.f32 %v750_v12  ;;  %v753_v2 = vadd.f32 1.0, %v1440_v59 }
 0x132   : > { %v1444_v49 = vpop.eup %1443  ;;  %1453 = vrcp.f32 %v737_v37  ;;  %v735_v32 = vadd.f32 1.0, %v1442_v63 }
 0x133   : > { %1455 = vrcp.f32 %v753_v2  ;;  %v751_v9 = vadd.f32 1.0, %v1444_v49  ;;  %v1446_v17 = vpop.eup %1445 }
 0x134   : > { %1457 = vrcp.f32 %v735_v32  ;;  %v800_v28 = vmul.f32 %v1446_v17, %v1705_v4 }
 0x135   : > { %1459 = vrcp.f32 %v751_v9 }
 0x136   : > { %v1448_v10 = vpop.eup %1447 }
 0x137   : > { %v816_v5 = vmul.f32 %v1448_v10, %v1733_v7 }
 0x13a   : > { %v1450_v19 = vpop.eup %1449 }
 0x13b   : > { %v1452_v22 = vpop.eup %1451  ;;  %v798_v16 = vmul.f32 %v1450_v19, %v1745_v42 }
 0x13c   : > { %v1454_v21 = vpop.eup %1453  ;;  %v814_v18 = vmul.f32 %v1452_v22, %v1751_v50 }
 0x13d   : > { %v1456_v25 = vpop.eup %1455  ;;  %v801_v30 = vmul.f32 %v1454_v21, %v1754_v33 }
 0x13e   : > { %v1458_v35 = vpop.eup %1457  ;;  %v817_v36 = vmul.f32 %v1456_v25, %v1759_v8 }
 0x13f   : > { %v1460_v41 = vpop.eup %1459  ;;  %v1184_v23 = vpack.c.bf16 %v801_v30, %v800_v28  ;;  %v799_v29 = vmul.f32 %v1458_v35, %v1763_v56 }
 0x140   : > { %v1224_v47 = vpack.c.bf16 %v817_v36, %v816_v5  ;;  %v815_v4 = vmul.f32 %v1460_v41, %v1768_v34 }
 0x141   : > { %1232 = vst [vmem:[%s1713_s8 + $0x38] sm:$0xff] %v1184_v23   ;;  %v1179_v13 = vpack.c.bf16 %v799_v29, %v798_v16 }
 0x142   : > { %1240 = vst [vmem:[%s1713_s8 + $0x78] sm:$0xff] %v1224_v47   ;;  %v1219_v33 = vpack.c.bf16 %v815_v4, %v814_v18 }
 0x143   : > { %1231 = vst [vmem:[%s1713_s8 + $0x30] sm:$0xff] %v1179_v13  }
 0x144   : > { %1239 = vst [vmem:[%s1713_s8 + $0x70] sm:$0xff] %v1219_v33  }
 0x145 PF: > { %s14_s15 = sadd.s32 1, %s1467_s15  }
 0x146   : > { %p11_p4 = scmp.ge.s32.totalorder %s14_s15, 4  }
 0x148   :  { %13 = sbr.rel (!%p11_p4) target bundleno = 1 (0x1), region = 66 }

</bundles_post_ra>
